<compile_context>
chip_gen: v7x
topology: tpu7x:2x2x1
jax: 0.10.0
libtpu: 0.0.40
codegen_flags: <defaults>
</compile_context>

<pallas_src>
import jax
import jax.numpy as jnp
from jax import lax
from jax.experimental import pallas as pl
from jax.experimental.pallas import tpu as pltpu

IN_FEATURES = 784
MAX_TILE_B = 2048   # 2 bufs x 2048 x 784 x 4B ~= 12.3 MiB -> fits v5e/v6e/v7x
MIN_TILE_B = 8      # f32 sublane granularity


def linear_kernel(x_ref, w_ref, b_ref, o_ref):
    # x_ref: (tile_b, 784) VMEM      w_ref: (1, 784) VMEM (resident, torch layout)
    # b_ref: (1,) SMEM scalar        o_ref: (1, tile_b) VMEM (lane-dense)
    acc = lax.dot_general(
        w_ref[...], x_ref[...],
        dimension_numbers=(((1,), (1,)), ((), ())),   # w @ x^T  -> (1, tile_b)
        preferred_element_type=jnp.float32,
    )
    o_ref[...] = (acc + b_ref[0]).astype(o_ref.dtype)


def _round_up(n, m):
    return ((n + m - 1) // m) * m


def _choose_tile_b(batch):
    # Enough tiles that no tile exceeds MAX_TILE_B.
    n_tiles = pl.cdiv(batch, MAX_TILE_B)
    # Prefer >= 2 grid steps so the "parallel" grid axis can shard across
    # v7x's two TensorCores (no-op on v5e/v6e).
    if batch > 2 * MIN_TILE_B:
        n_tiles = max(n_tiles, 2)
    # Balanced tile (multiple of 8) -> over-read bounded by a handful of rows.
    tile_b = _round_up(pl.cdiv(batch, n_tiles), MIN_TILE_B)
    return min(tile_b, MAX_TILE_B)


def the_model_forward(x_nchw, w, b):
    """x_nchw: (B, 1, 28, 28) f32; w: (1, 784) f32 (torch Linear layout);
    b: (1,) f32  ->  (B,) f32."""
    B = x_nchw.shape[0]
    if B == 0:
        return jnp.zeros((0,), jnp.float32)

    # Row-major flatten, same element order as torch.flatten(start_dim=1).
    x2d = x_nchw.reshape(B, -1)
    assert x2d.shape[1] == IN_FEATURES

    tile_b = _choose_tile_b(B)
    num_tiles = pl.cdiv(B, tile_b)   # no padding: partial last block handled

    cost = pl.CostEstimate(
        flops=2 * B * IN_FEATURES,
        transcendentals=0,
        bytes_accessed=B * IN_FEATURES * 4 + IN_FEATURES * 4 + B * 4,
    )

    out = pl.pallas_call(
        linear_kernel,
        out_shape=jax.ShapeDtypeStruct((num_tiles, tile_b), jnp.float32),
        grid=(num_tiles,),
        in_specs=[
            # x: one batch tile per grid step (double-buffered by Pallas)
            pl.BlockSpec((tile_b, IN_FEATURES), lambda i: (i, 0)),
            # w: resident across all grid steps
            pl.BlockSpec((1, IN_FEATURES), lambda i: (0, 0)),
            # bias: scalar in SMEM (no padded VMEM tile)
            pl.BlockSpec(memory_space=pltpu.MemorySpace.SMEM),
        ],
        # lane-dense output block: one (1, tile_b) row per grid step
        out_specs=pl.BlockSpec((1, tile_b), lambda i: (i, 0)),
        compiler_params=pltpu.CompilerParams(
            dimension_semantics=("parallel",),      # megacore on v7x
            vmem_limit_bytes=32 * 1024 * 1024,      # safe on v5e/v6e/v7x
        ),
        cost_estimate=cost,
    )(x2d, w, b)

    # (num_tiles, tile_b) -> (B,): row i of out holds batch rows
    # [i*tile_b, (i+1)*tile_b); garbage lanes from the partial block are
    # discarded by the slice (torch's final .flatten()).
    return out.reshape(-1)[:B]


if __name__ == "__main__":
    key = jax.random.PRNGKey(0)
    k_x, k_w, k_b = jax.random.split(key, 3)

    B = 2
    # Input consistent with 784 = 1 * 28 * 28 (NCHW)
    x = jax.random.normal(k_x, (B, 1, 28, 28), dtype=jnp.float32)

    # torch.nn.Linear(784, 1): weight (1, 784), bias (1,)  (kept in torch layout)
    bound = 1.0 / (IN_FEATURES ** 0.5)
    w = jax.random.uniform(k_w, (1, IN_FEATURES), dtype=jnp.float32,
                           minval=-bound, maxval=bound)
    b = jax.random.uniform(k_b, (1,), dtype=jnp.float32,
                           minval=-bound, maxval=bound)

    y = the_model_forward(x, w, b)
    jax.block_until_ready(y)

    # reference check in plain JAX
    y_ref = (x.reshape(B, -1) @ w.T + b[None, :]).reshape(B)
    assert y.shape == (B,)
    assert jnp.allclose(y, y_ref, atol=1e-5, rtol=1e-5)

    print("KERNEL_OK")
</pallas_src>

<mosaic_0001>
module attributes {stable_mosaic.version = 11 : i64} {
  func.func @linear_kernel(%arg0: i32, %arg1: memref<8x784xf32, #tpu.memory_space<vmem>>, %arg2: memref<1x784xf32, #tpu.memory_space<vmem>>, %arg3: memref<1xf32, #tpu.memory_space<smem>>, %arg4: memref<1x8xf32, #tpu.memory_space<vmem>>) attributes {dimension_semantics = [#tpu.dimension_semantics<parallel>], iteration_bounds = array<i64: 1>, scalar_prefetch = 0 : i64, scratch_operands = 0 : i64, tpu.core_type = #tpu.core_type<tc>, window_params = [{transform_indices = @transform_0, window_bounds = array<i64: 8, 784>}, {pipeline_mode = #tpu.pipeline_mode<synchronous>, transform_indices = @transform_1, window_bounds = array<i64: 1, 784>}, {transform_indices = @transform_2, window_bounds = array<i64: 1>}, {transform_indices = @transform_3, window_bounds = array<i64: 1, 8>}]} {
    %c0 = arith.constant 0 : index
    %c0_0 = arith.constant 0 : index
    %0 = vector.load %arg2[%c0, %c0_0] : memref<1x784xf32, #tpu.memory_space<vmem>>, vector<1x784xf32>
    %c0_1 = arith.constant 0 : index
    %c0_2 = arith.constant 0 : index
    %1 = vector.load %arg1[%c0_1, %c0_2] : memref<8x784xf32, #tpu.memory_space<vmem>>, vector<8x784xf32>
    %cst = arith.constant dense<0.000000e+00> : vector<1x8xf32>
    %2 = tpu.matmul %0, %1, %cst {dimension_numbers = #tpu.dot_dimension_numbers<[1], [1], [0], [0], [0, 0, 1, 0], [], []>} : vector<1x784xf32>, vector<8x784xf32>, vector<1x8xf32> -> vector<1x8xf32>
    %c0_3 = arith.constant 0 : index
    %3 = memref.load %arg3[%c0_3] : memref<1xf32, #tpu.memory_space<smem>>
    %4 = vector.broadcast %3 : f32 to vector<1x8xf32>
    %5 = arith.addf %2, %4 : vector<1x8xf32>
    %c0_4 = arith.constant 0 : index
    %c0_5 = arith.constant 0 : index
    %6 = vector.load %arg4[%c0_4, %c0_5] : memref<1x8xf32, #tpu.memory_space<vmem>>, vector<1x8xf32>
    tpu.vector_store %arg4[%c0_4, %c0_5], %5 {strides = array<i32>} : memref<1x8xf32, #tpu.memory_space<vmem>>, vector<1x8xf32>,
    return
  }
  func.func @transform_0(%arg0: i32) -> (i32, i32) {
    %c0_i32 = arith.constant 0 : i32
    %c0_i32_0 = arith.constant 0 : i32
    return %arg0, %c0_i32 : i32, i32
  }
  func.func @transform_1(%arg0: i32) -> (i32, i32) {
    %c0_i32 = arith.constant 0 : i32
    %c0_i32_0 = arith.constant 0 : i32
    %c0_i32_1 = arith.constant 0 : i32
    return %c0_i32, %c0_i32_0 : i32, i32
  }
  func.func @transform_2(%arg0: i32) -> i32 {
    %c0_i32 = arith.constant 0 : i32
    %c0_i32_0 = arith.constant 0 : i32
    return %c0_i32 : i32
  }
  func.func @transform_3(%arg0: i32) -> (i32, i32) {
    %c0_i32 = arith.constant 0 : i32
    %c0_i32_0 = arith.constant 0 : i32
    return %arg0, %c0_i32 : i32, i32
  }
}

</mosaic_0001>

<bundles_post_ra>
// kernel: tpu_custom_call.1
= control target key start
LH: loop header
LB: loop body
LE: loop exit
PB: predicated region body
PF: predicated region fallthrough
CT: control target
= control target key end

     0   :  { %9 = vsyncpa [#allocation4], 0  ;;  %s602_s0 = inlined_call_operand.hbm [shape: f32[2,784], index: 0, kind: input, shape index: {}]   ;;  %s603_s1 = inlined_call_operand.vmem [shape: f32[1,784], index: 1, kind: input, shape index: {}]   ;;  %s604_s2 = inlined_call_operand.<no memory space> [shape: f32[1], index: 2, kind: input, shape index: {}]   ;;  %s605_s3 = inlined_call_operand.hbm [shape: f32[1,8], index: 3, kind: output, shape index: {}]  }
   0x1   :  { %10 = vsyncpa [#allocation5], 0 }
   0x2   :  { %15 = vsyncadd [#allocation4], 672  ;;  %s545_s12 = smov [#allocation3]   ;;  %s497_s16 = scalar_lea.hbm %s602_s0, 224 }
   0x3   :  { %s16_s13 = sshll.u32 %s545_s12, 4  ;;  %p498_p0 = scmp.ne.s32.totalorder %s602_s0, %s497_s16  ;;  %s17_s13 = int_to_ptr.vmem [resolvable:$true] %s16_s13 }
   0x4   :  { %p501_p1 = scmp.lt.u32.totalorder %s497_s16, %s602_s0 }
   0x6   :  { %p503_p2 = pnand %p501_p1, %p498_p0 }
   0x8   :  { %506 = shalt.err (!%p503_p2)
}
   0x9   :  { %s507_s21 = scalar_lea.vmem %s17_s13, 224  ;;  %s511_s22 = scalar_lea.vmem %s17_s13, 896 }
   0xa   :  { %p508_p3 = scmp.ne.s32.totalorder %s17_s13, %s507_s21  ;;  %p512_p4 = scmp.lt.s32.totalorder %s17_s13, %s17_s13 }
   0xb   :  { %p513_p5 = scmp.lt.s32.totalorder %s511_s22, %s507_s21 }
   0xd   :  { %p514_p6 = por %p513_p5, %p512_p4 }
   0xf   :  { %p515_p7 = pnand %p514_p6, %p508_p3 }
  0x11   :  { %518 = shalt.err (!%p515_p7)
}
  0x12   :  { %s546_s23 = smov 224   ;;  %s547_s24 = smov 14  }
  0x13   :  { %22 = dma.hbm_to_vmem [thread:$0]  %s602_s0, 224, %s17_s13, [#allocation4], %s546_s23, %s546_s23, %s547_s24  }
  0x14   :  { %541 = dma.done.wait [#allocation4], 896  }
  0x15   :  { %542 = vsyncadd [#allocation4], 4294966400  ;;  %v42_v0 = vlaneseq  ;;  %v548_v1 = vmov 1983009808   ;;  %v485_v7 = vld [vmem:[#allocation3] ss:$14 sps:$4 sm:$0xff]   ;;  %v40_v45 = vstv %s604_s2 }
  0x16   :  { %v89_v2 = vunpack.c.l.s4 %v548_v1  ;;  %v487_v8 = vld [vmem:[#allocation3 + $0x4] ss:$14 sps:$4 sm:$0xff]   ;;  %v488_v10 = vld [vmem:[#allocation3 + $0x1c] ss:$14 sps:$4 sm:$0xff]   ;;  %v490_v11 = vld [vmem:[#allocation3 + $0x20] ss:$14 sps:$4 sm:$0xff]  }
  0x17   :  { %v43_v3 = vshrl.u32 %v42_v0, 7  ;;  %v491_v14 = vld [vmem:[#allocation3 + $0x8] ss:$14 sps:$4 sm:$0xff]   ;;  %v493_v15 = vld [vmem:[#allocation3 + $0xc] ss:$14 sps:$4 sm:$0x33]  }
  0x18   :  { %v90_v4 = vunpack.c.0.s8 %v89_v2  ;;  %v494_v19 = vld [vmem:[#allocation3 + $0x24] ss:$14 sps:$4 sm:$0xff]   ;;  %v496_v20 = vld [vmem:[#allocation3 + $0x28] ss:$14 sps:$4 sm:$0x33]   ;;  %v549_v41 = vmov 0.0  }
  0x19   :  { %v48_v6 = vsub.s32 1, %v43_v3  ;;  %v64_v9 = vsub.s32 5, %v43_v3  ;;  %v44_v16 = vsub.s32 0, %v43_v3  ;;  %v30_v24 = vld [vmem:[%s603_s1] sm:$0x7f]  ;;  %v56_v25 = vsub.s32 3, %v43_v3 }
  0x1a   :  { %v93_v5 = vsub.s32 %v90_v4, %v43_v3  ;;  %v60_v29 = vsub.s32 4, %v43_v3  ;;  %v52_v40 = vsub.s32 2, %v43_v3  ;;  %vm161_vm0 = vcmask 130048   ;;  %s551_s29 = smov [#allocation6]  }
  0x1b   :  { %v49_v27 = vrot.slane %v30_v24, %v48_v6  ;;  %v65_v28 = vrot.slane %v30_v24, %v64_v9  ;;  %v45_v32 = vrot.slane %v30_v24, %v44_v16  ;;  %v57_v37 = vrot.slane %v30_v24, %v56_v25  ;;  %s454_s30 = sshll.u32 %s551_s29, 4  ;;  %s455_s30 = int_to_ptr.vmem [resolvable:$true] %s454_s30 }
  0x1c   :  { %v94_v12 = vrot.slane %v485_v7, %v93_v5  ;;  %v108_v13 = vrot.slane %v488_v10, %v93_v5  ;;  %v101_v17 = vrot.slane %v487_v8, %v93_v5  ;;  %v115_v18 = vrot.slane %v490_v11, %v93_v5  ;;  %s519_s4 = scalar_lea.vmem %s455_s30, 16  ;;  %s523_s5 = scalar_lea.vmem %s455_s30, 32 }
  0x1d   :  { %v130_v22 = vrot.slane %v491_v14, %v93_v5  ;;  %v144_v26 = vrot.slane %v494_v19, %v93_v5  ;;  %v137_v30 = vrot.slane %v493_v15, %v93_v5  ;;  %v151_v31 = vrot.slane %v496_v20, %v93_v5  ;;  %230 = vmatprep.mubr.f32.mxu1 %v49_v27  ;;  %p520_p8 = scmp.ne.s32.totalorder %s455_s30, %s519_s4  ;;  %p524_p9 = scmp.lt.s32.totalorder %s455_s30, %s455_s30 }
  0x1e   :  { %v117_v21 = vcombine.high %v94_v12, %v108_v13  ;;  %v116_v23 = vcombine.low %v94_v12, %v108_v13  ;;  %v119_v33 = vcombine.high %v101_v17, %v115_v18  ;;  %v118_v36 = vcombine.low %v101_v17, %v115_v18  ;;  %370 = vmatprep.mubr.f32.mxu0 %v65_v28  ;;  %p525_p10 = scmp.lt.s32.totalorder %s523_s5, %s519_s4 }
  0x1f   :  { %v153_v34 = vcombine.high %v130_v22, %v144_v26  ;;  %v152_v35 = vcombine.low %v130_v22, %v144_v26  ;;  %v61_v38 = vrot.slane %v30_v24, %v60_v29  ;;  %v154_v39 = vcombine.low %v137_v30, %v151_v31 }
  0x20   :  { %166 = vmatprep.subr.mxu1 %v117_v21  ;;  %v68_v42 = vsub.s32 6, %v43_v3  ;;  %vm550_vm1 = vmmov 0   ;;  %v53_v43 = vrot.slane %v30_v24, %v52_v40  ;;  %vm446_vm2 = vcmask 57344   ;;  %p526_p11 = por %p525_p10, %p524_p9 }
  0x21   :  { %167 = vmatpush1.xpose.msra.mxu1 %v116_v23  ;;  %306 = vmatprep.subr.mxu0 %v153_v34 }
  0x22   :  { %236 = vmatprep.subr.mxu1 %v119_v33  ;;  %307 = vmatpush1.xpose.msra.mxu0 %v152_v35  ;;  %v69_v44 = vrot.slane %v30_v24, %v68_v42  ;;  %p527_p12 = pnand %p526_p11, %p520_p8 }
  0x23   :  { %467 = vmatprep.subr.mxu0 %v549_v41 }
  0x24   :  { %231 = vmatmul.mubr.f32.vlgmr.msra.gmra.mrb[0].mxu1 %v45_v32 }
  0x25   :  { %237 = vmatpush1.xpose.msra.mxu1 %v118_v36  ;;  %300 = vmatprep.mubr.f32.mxu1 %v57_v37 }
  0x26   :  { %371 = vmatmul.mubr.f32.vlgmr.msra.gmra.mrb[0].mxu0 %v61_v38 }
  0x27   :  { %468 = vmatpush3.xpose.msk.msra.mxu0 %vm161_vm0, %v154_v39  ;;  %469 = vmatprep.mubr.msk.f32.mxu0 %vm550_vm1, %v549_v41 }
  0x2c   :  { %301 = vmatmul.mubr.f32.vlgmr.msra.gmra.mrb[0].mxu1 %v53_v43 }
  0x2e   :  { %470 = vmatmul.mubr.msk.f32.vlgmr.msra.gmra.mrb[0].mxu0 %vm161_vm0, %v69_v44 }
  0xff   :  { %v302_v46 = vpop.f32.mrb[0].mxu1 }
 0x100   :  { %v472_v47 = vadd.f32 %v302_v46, %v40_v45  ;;  %v304_v48 = vpop.f32.mrb[1].mxu1 }
 0x101   :  { %v442_v49 = vpop.f32.mrb[0].mxu0 }
 0x102   :  { %v473_v50 = vadd.f32 %v472_v47, %v442_v49  ;;  %v471_v51 = vpop.f32.mrb[1].mxu0 }
 0x104   :  { %447 = vst.msk [vmem:[#allocation6] sm:$0x1] %vm446_vm2, %v473_v50 }
 0x105   :  { %530 = shalt.err (!%p527_p12)
}
 0x106   :  { %s531_s7 = scalar_lea.hbm %s605_s3, 16 }
 0x107   :  { %p532_p13 = scmp.ne.s32.totalorder %s605_s3, %s531_s7  ;;  %p535_p0 = scmp.lt.u32.totalorder %s531_s7, %s605_s3 }
 0x109   :  { %p537_p1 = pnand %p535_p0, %p532_p13 }
 0x10b   :  { %540 = shalt.err (!%p537_p1)
}
 0x10c   :  { %457 = dma.vmem_to_hbm [thread:$0]  %s455_s30, 16, %s605_s3, [#allocation5]  }
 0x10d   :  { %543 = dma.done.wait [#allocation5], 16  }
 0x10e   :  { %544 = vsyncadd [#allocation5], 4294967280 }
 0x10f   :  { %461 = vsyncpa [#allocation4], 1 }
 0x110   :  { %462 = vsyncpa [#allocation5], 1 }

</bundles_post_ra>
